<compile_context>
chip_gen: v7x
topology: tpu7x:2x2x1
jax: 0.10.0
libtpu: 0.0.40
codegen_flags: <defaults>
</compile_context>

<pallas_src>
import jax
import jax.numpy as jnp
from jax.experimental import pallas as pl
from jax.experimental.pallas import tpu as pltpu

N_PARAMS = 100


def _sum_abs_kernel(param_ref, noise_ref, out_ref):
    # param_ref: VMEM (1, 100) f32   -- the parameter vector
    # noise_ref: VMEM (1, 100) f32   -- U[0,1) noise
    # out_ref  : SMEM (1, 1)   f32   -- scalar |sum(param + noise*0.01)|
    x = param_ref[...] + noise_ref[...] * jnp.float32(0.01)
    out_ref[0, 0] = jnp.abs(jnp.sum(x))


@jax.jit
def my_model_forward(param: jax.Array, key: jax.Array) -> jax.Array:
    """param: (100,) f32.  Returns scalar |sum(param + U[0,1)*0.01)|."""
    param2d = param.astype(jnp.float32).reshape(1, N_PARAMS)
    noise2d = jax.random.uniform(key, (1, N_PARAMS), dtype=jnp.float32)

    out = pl.pallas_call(
        _sum_abs_kernel,
        out_shape=jax.ShapeDtypeStruct((1, 1), jnp.float32),
        in_specs=[
            pl.BlockSpec(memory_space=pltpu.VMEM),   # param (full array block)
            pl.BlockSpec(memory_space=pltpu.VMEM),   # noise (full array block)
        ],
        out_specs=pl.BlockSpec(memory_space=pltpu.SMEM),
    )(param2d, noise2d)
    return out[0, 0]


if __name__ == "__main__":
    key = jax.random.PRNGKey(0)
    # Deterministic parameter init: matches nn.Parameter(torch.ones(100)).
    param = jnp.ones((N_PARAMS,), dtype=jnp.float32)

    result = my_model_forward(param, key)
    result = jax.block_until_ready(result)

    val = float(result)
    # sum(param) = 100; noise adds ~100 * E[U]*0.01 ~= 0.5 -> result ~ 100.5.
    assert jnp.isfinite(result), f"non-finite result: {val}"
    assert 99.5 <= val <= 101.5, f"result out of expected range: {val}"
    print("KERNEL_OK")
</pallas_src>

<mosaic_0001>
module attributes {stable_mosaic.version = 11 : i64} {
  func.func @_sum_abs_kernel(%arg0: memref<1x100xf32, #tpu.memory_space<vmem>>, %arg1: memref<1x100xf32, #tpu.memory_space<vmem>>, %arg2: memref<1x1xf32, #tpu.memory_space<smem>>) attributes {dimension_semantics = [], scalar_prefetch = 0 : i64, scratch_operands = 0 : i64, tpu.core_type = #tpu.core_type<tc>} {
    %c0 = arith.constant 0 : index
    %c0_0 = arith.constant 0 : index
    %0 = vector.load %arg0[%c0, %c0_0] : memref<1x100xf32, #tpu.memory_space<vmem>>, vector<1x100xf32>
    %c0_1 = arith.constant 0 : index
    %c0_2 = arith.constant 0 : index
    %1 = vector.load %arg1[%c0_1, %c0_2] : memref<1x100xf32, #tpu.memory_space<vmem>>, vector<1x100xf32>
    %cst = arith.constant 0.00999999977 : f32
    %2 = vector.broadcast %cst : f32 to vector<1x100xf32>
    %3 = arith.mulf %1, %2 : vector<1x100xf32>
    %4 = arith.addf %0, %3 : vector<1x100xf32>
    %5 = vector.shape_cast %4 : vector<1x100xf32> to vector<1x1x100xf32>
    %cst_3 = arith.constant dense<0.000000e+00> : vector<1xf32>
    %6 = vector.multi_reduction <add>, %5, %cst_3 [1, 2] : vector<1x1x100xf32> to vector<1xf32>
    %7 = vector.shape_cast %6 : vector<1xf32> to vector<1x1x1xf32>
    %8 = vector.extract %7[0, 0, 0] : f32 from vector<1x1x1xf32>
    %9 = math.absf %8 : f32
    %c0_4 = arith.constant 0 : index
    %c0_5 = arith.constant 0 : index
    %10 = memref.load %arg2[%c0_4, %c0_5] : memref<1x1xf32, #tpu.memory_space<smem>>
    memref.store %9, %arg2[%c0_4, %c0_5] : memref<1x1xf32, #tpu.memory_space<smem>>
    return
  }
}

</mosaic_0001>

<bundles_post_ra>
// kernel: my_model_forward.1
= control target key start
LH: loop header
LB: loop body
LE: loop exit
PB: predicated region body
PF: predicated region fallthrough
CT: control target
= control target key end

     0   :  { %s92_s0 = inlined_call_operand.vmem [shape: f32[1,100], index: 0, kind: input, shape index: {}]   ;;  %s93_s1 = inlined_call_operand.vmem [shape: f32[1,100], index: 1, kind: input, shape index: {}]   ;;  %s94_s2 = inlined_call_operand.hbm [shape: f32[1,1], index: 2, kind: output, shape index: {}]  }
   0x1   :  { %v12_v0 = vld [vmem:[%s92_s0] sm:$0x1] }
   0x2   :  { %v13_v1 = vld [vmem:[%s93_s1] sm:$0x1] }
   0x3   :  { %v14_v2 = vmul.f32 0.01, %v13_v1 }
   0x4   :  { %7 = vsyncpa [#allocation3], 0  ;;  %vm16_vm0 = vcmask 811008   ;;  %s46_s1 = scalar_lea.hbm %s94_s2, 16 }
   0x5   :  { %v15_v3 = vadd.f32 %v14_v2, %v12_v0  ;;  %p47_p0 = scmp.ne.s32.totalorder %s94_s2, %s46_s1  ;;  %p50_p1 = scmp.lt.u32.totalorder %s46_s1, %s94_s2 }
   0x7   :  { %v17_v4 = vsel %vm16_vm0, %v15_v3, 0.0  ;;  %p52_p2 = pnand %p50_p1, %p47_p0 }
   0x8   :  { %18 = vadd.xlane.f32.xlu0 %v17_v4 }
  0x95   :  { %v19_v5 = vpop.xlane.xlu0 %18 }
  0x96   :  { %v20_v6 = vrot.slane %v19_v5, 4 }
  0x98   :  { %v21_v7 = vadd.f32 %v20_v6, %v19_v5 }
  0x9a   :  { %v22_v8 = vrot.slane %v21_v7, 2 }
  0x9c   :  { %v23_v9 = vadd.f32 %v22_v8, %v21_v7 }
  0x9e   :  { %v24_v10 = vrot.slane %v23_v9, 1 }
  0xa0   :  { %v25_v11 = vadd.f32 %v24_v10, %v23_v9 }
  0xa2   :  { %43 = vpush %v25_v11 }
  0xd3   :  { %s44_s13 = spop %43 }
  0xd4   :  { %s27_s0 = sand.u32 2147483647, %s44_s13 }
  0xd5   :  { %29 = sst [smem:[#allocation2]] %s27_s0 }
  0xd6   :  { %55 = shalt.err (!%p52_p2)
}
  0xd7   :  { %s58_s20 = smov [#allocation2]  }
  0xd8   :  { %37 = dma.smem_to_hbm %s58_s20, 16, %s94_s2, [#allocation3]  }
  0xd9   :  { %56 = dma.done.wait [#allocation3], 16  }
  0xda   :  { %57 = vsyncadd [#allocation3], 4294967280 }
  0xdb   :  { %41 = sfence }
  0xdc   :  { %42 = vsyncpa [#allocation3], 1 }

</bundles_post_ra>
